<compile_context>
chip_gen: v7x
topology: tpu7x:2x2x1
jax: 0.10.0
libtpu: 0.0.40
codegen_flags: <defaults>
</compile_context>

<pallas_src>
import functools
import math

import jax
import jax.numpy as jnp
from jax.experimental import pallas as pl
from jax.experimental.pallas import tpu as pltpu


def _round_up(v, m):
    return (v + m - 1) // m * m


def _tile_padded_bytes(shape, dtype):
    """VMEM footprint of a buffer with its last two dims padded to the (sublane, 128) tile."""
    dt = jnp.dtype(dtype)
    sublane = 8 * max(1, 4 // dt.itemsize)   # 8 rows for 4-byte, 16 for 2-byte, 32 for 1-byte
    if len(shape) < 2:
        shape = (1,) * (2 - len(shape)) + tuple(shape)
    lead = 1
    for d in shape[:-2]:
        lead *= int(d)
    rows = _round_up(int(shape[-2]), sublane)
    lanes = _round_up(int(shape[-1]), 128)
    return lead * rows * lanes * dt.itemsize


def _pick_block_images(n, per_image_bytes, budget_bytes, max_unroll=8):
    """Largest divisor of n that fits the VMEM budget, keeps >=4 grid steps when possible
    (>= 2 steps per TensorCore on v7x megacore) and caps the per-step unrolled image loop."""
    min_steps = 4 if n >= 4 else (2 if n >= 2 else 1)
    best = 1
    for tb in range(1, min(n, max_unroll) + 1):
        if n % tb:
            continue
        if tb * per_image_bytes > budget_bytes:
            continue
        if n // tb >= min_steps:
            best = tb
    return best


def _coordconv_kernel(w_ref, cb_ref, x_ref, o_ref, *, k, wpad, l_out, tb):
    """One grid step = TB images; conv as K*K tap-wise MXU matmuls over image channels.

    w_ref : VMEM (K*K, Cout, Cin)  — per-tap weight tiles, tap = di*K + dj
    cb_ref: VMEM (Cout, L) f32     — conv bias + coordinate-channel contribution (flat coords)
    x_ref : VMEM (TB, Cin, Nflat)  — zero-padded images, spatial flattened row-major (Wpad cols)
    o_ref : VMEM (TB, Cout, L)     — conv output at flat padded coordinates (cropped by wrapper)
    """
    cb = cb_ref[...]                                   # (Cout, L) f32, loaded once per step
    for b in range(tb):                                # tb is static and small (<= 8)
        acc = cb                                       # accumulator starts at bias + coord map
        for di in range(k):
            for dj in range(k):
                tap = di * k + dj
                s = di * wpad + dj                     # flat offset of tap (di, dj)
                win = x_ref[b, :, s:s + l_out]         # (Cin, L) lane-dense shifted window
                acc = acc + jnp.dot(w_ref[tap], win,   # (Cout, Cin) @ (Cin, L) on the MXU
                                    preferred_element_type=jnp.float32)
        o_ref[b] = acc.astype(o_ref.dtype)


def coord_conv(x, weight, bias=None, *, padding=1, with_r=False, block_images=None):
    """x: (N, Cin, H, W); weight: (Cout, Cin+2(+1), K, K); bias: (Cout,).

    Returns (N, Cout, Hout, Wout), matching CoordConv(...).forward(x) with a stride-1 conv.
    """
    n, cin, h, w = x.shape
    cout, ct, k, k2 = weight.shape
    n_coord = 2 + (1 if with_r else 0)
    assert k == k2, "square conv kernels only"
    assert ct == cin + n_coord, "weight in_channels must include the coord channels"
    # AddCoords' torch.cat only works for square spatial dims; match that constraint.
    assert h == w, "CoordConv (AddCoords) requires H == W"
    assert h >= 2
    p = int(padding)
    hp, wp = h + 2 * p, w + 2 * p
    hout, wout = hp - k + 1, wp - k + 1
    assert hout > 0 and wout > 0

    out_dtype = x.dtype
    cdt = jnp.bfloat16 if x.dtype == jnp.bfloat16 else jnp.float32
    if bias is None:
        bias = jnp.zeros((cout,), jnp.float32)

    # --- fold the image-independent coordinate channels (+ bias) into a bias map (XLA, once)
    col = jnp.arange(w, dtype=jnp.float32)
    row = jnp.arange(h, dtype=jnp.float32)
    xx = jnp.broadcast_to(col[None, :], (h, w)) * (2.0 / (w - 1)) - 1.0   # with h == w this is
    yy = jnp.broadcast_to(row[:, None], (h, w)) * (2.0 / (h - 1)) - 1.0   # exactly AddCoords
    planes = [xx, yy] + ([jnp.sqrt(xx * xx + yy * yy)] if with_r else [])
    coords = jnp.stack(planes)[None]                                      # (1, n_coord, H, W)
    w_coord = weight[:, cin:, :, :].astype(jnp.float32)
    cbias = jax.lax.conv_general_dilated(
        coords, w_coord, window_strides=(1, 1), padding=[(p, p), (p, p)],
        dimension_numbers=("NCHW", "OIHW", "NCHW"),
        precision=jax.lax.Precision.HIGHEST)[0]
    cbias = cbias + bias.astype(jnp.float32)[:, None, None]               # (Cout, Hout, Wout)

    # --- flat, lane-dense layout (wrapper-side XLA plumbing, all buffers tiny vs. the conv)
    l_out = _round_up(hp * wp, 128)              # lane width of the matmul result / output
    max_shift = (k - 1) * wp + (k - 1)           # largest tap offset in flat coordinates
    nflat = _round_up(l_out + max_shift, 128)    # flat padded-input row length
    xflat = jnp.pad(x.astype(cdt), ((0, 0), (0, 0), (p, p), (p, p)))      # (N, Cin, Hp, Wp)
    xflat = xflat.reshape(n, cin, hp * wp)
    xflat = jnp.pad(xflat, ((0, 0), (0, 0), (0, nflat - hp * wp)))        # (N, Cin, Nflat)

    cb = jnp.pad(cbias, ((0, 0), (0, hp - hout), (0, wp - wout)))         # to padded grid
    cb = jnp.pad(cb.reshape(cout, hp * wp), ((0, 0), (0, l_out - hp * wp)))  # (Cout, L) f32

    # per-tap weight tiles: w_taps[di*K+dj, co, ci] = weight[co, ci, di, dj]
    w_taps = jnp.transpose(weight[:, :cin, :, :].astype(cdt), (2, 3, 0, 1))
    w_taps = w_taps.reshape(k * k, cout, cin)

    # --- block-of-images sizing with (sublane, 128)-tile-aware VMEM accounting
    if block_images is None:
        per_img = (2 * _tile_padded_bytes((1, cin, nflat), cdt)           # double-buffered in
                   + 2 * _tile_padded_bytes((1, cout, l_out), out_dtype))  # double-buffered out
        const = 2 * (_tile_padded_bytes(w_taps.shape, cdt)
                     + _tile_padded_bytes(cb.shape, jnp.float32))
        budget = 24 * 1024 * 1024                # safe on v7x (64 MiB VMEM) and v5e/v6e
        block_images = _pick_block_images(n, per_img, budget - const)
    tb = block_images
    assert n % tb == 0
    grid = (n // tb,)

    kernel = functools.partial(_coordconv_kernel, k=k, wpad=wp, l_out=l_out, tb=tb)
    out = pl.pallas_call(
        kernel,
        out_shape=jax.ShapeDtypeStruct((n, cout, l_out), out_dtype),
        grid=grid,
        in_specs=[
            pl.BlockSpec((k * k, cout, cin), lambda i: (0, 0, 0)),   # per-tap weights, resident
            pl.BlockSpec((cout, l_out), lambda i: (0, 0)),           # coord+bias map, resident
            pl.BlockSpec((tb, cin, nflat), lambda i: (i, 0, 0)),     # TB flat padded images
        ],
        out_specs=pl.BlockSpec((tb, cout, l_out), lambda i: (i, 0, 0)),
        compiler_params=pltpu.CompilerParams(
            dimension_semantics=("parallel",),
            vmem_limit_bytes=32 * 1024 * 1024),
    )(w_taps, cb, xflat)

    # un-flatten + crop: free reshape plus a small slice in XLA
    out = out[:, :, :hp * wp].reshape(n, cout, hp, wp)[:, :, :hout, :wout]
    return out


def _coordconv_reference(x, weight, bias, padding=1, with_r=False):
    """Pure-JAX reference: AddCoords + conv2d (cross-correlation) at HIGHEST f32 precision."""
    n, _, h, w = x.shape
    xx = jnp.arange(w, dtype=jnp.float32) * (2.0 / (w - 1)) - 1.0
    yy = jnp.arange(h, dtype=jnp.float32) * (2.0 / (h - 1)) - 1.0
    xx_ch = jnp.broadcast_to(xx[None, None, None, :], (n, 1, h, w))
    yy_ch = jnp.broadcast_to(yy[None, None, :, None], (n, 1, h, w))
    chans = [x.astype(jnp.float32), xx_ch, yy_ch]
    if with_r:
        chans.append(jnp.sqrt(xx_ch ** 2 + yy_ch ** 2))
    ret = jnp.concatenate(chans, axis=1)
    out = jax.lax.conv_general_dilated(
        ret, weight.astype(jnp.float32), (1, 1),
        [(padding, padding), (padding, padding)],
        dimension_numbers=("NCHW", "OIHW", "NCHW"),
        precision=jax.lax.Precision.HIGHEST)
    return (out + bias.astype(jnp.float32)[None, :, None, None]).astype(x.dtype)


if __name__ == "__main__":
    N, Cin, H, W = 2, 4, 16, 16
    Cout, K, P = 8, 3, 1

    key = jax.random.PRNGKey(0)
    kx, kw, kb = jax.random.split(key, 3)
    x = jax.random.normal(kx, (N, Cin, H, W), dtype=jnp.float32)

    fan_in = (Cin + 2) * K * K
    bound = 1.0 / math.sqrt(fan_in)
    weight = jax.random.uniform(kw, (Cout, Cin + 2, K, K), jnp.float32, -bound, bound)
    bias = jax.random.uniform(kb, (Cout,), jnp.float32, -bound, bound)

    y = coord_conv(x, weight, bias, padding=P)
    jax.block_until_ready(y)

    y_ref = _coordconv_reference(x, weight, bias, padding=P)
    assert y.shape == (N, Cout, H, W), y.shape
    assert y.dtype == x.dtype, y.dtype
    err = float(jnp.max(jnp.abs(y - y_ref)))
    # Tolerance is MXU-pass-mode agnostic; genuine tap/index/coord/bias bugs are O(0.1-1).
    assert jnp.allclose(y, y_ref, rtol=1e-2, atol=1e-2), err
    print("KERNEL_OK")
</pallas_src>

<mosaic_0001>
module attributes {stable_mosaic.version = 11 : i64} {
  func.func @_coordconv_kernel(%arg0: i32, %arg1: memref<9x8x4xf32, #tpu.memory_space<vmem>>, %arg2: memref<8x384xf32, #tpu.memory_space<vmem>>, %arg3: memref<1x4x512xf32, #tpu.memory_space<vmem>>, %arg4: memref<1x8x384xf32, #tpu.memory_space<vmem>>) attributes {dimension_semantics = [#tpu.dimension_semantics<parallel>], iteration_bounds = array<i64: 2>, scalar_prefetch = 0 : i64, scratch_operands = 0 : i64, tpu.core_type = #tpu.core_type<tc>, window_params = [{pipeline_mode = #tpu.pipeline_mode<synchronous>, transform_indices = @transform_0, window_bounds = array<i64: 9, 8, 4>}, {pipeline_mode = #tpu.pipeline_mode<synchronous>, transform_indices = @transform_1, window_bounds = array<i64: 8, 384>}, {transform_indices = @transform_2, window_bounds = array<i64: 1, 4, 512>}, {transform_indices = @transform_3, window_bounds = array<i64: 1, 8, 384>}]} {
    %c0 = arith.constant 0 : index
    %c0_0 = arith.constant 0 : index
    %0 = vector.load %arg2[%c0, %c0_0] : memref<8x384xf32, #tpu.memory_space<vmem>>, vector<8x384xf32>
    %c0_1 = arith.constant 0 : index
    %c0_2 = arith.constant 0 : index
    %c0_3 = arith.constant 0 : index
    %1 = vector.load %arg3[%c0_1, %c0_2, %c0_3] : memref<1x4x512xf32, #tpu.memory_space<vmem>>, vector<1x4x384xf32>
    %2 = vector.shape_cast %1 : vector<1x4x384xf32> to vector<4x384xf32>
    %c0_4 = arith.constant 0 : index
    %c0_5 = arith.constant 0 : index
    %c0_6 = arith.constant 0 : index
    %3 = vector.load %arg1[%c0_4, %c0_5, %c0_6] : memref<9x8x4xf32, #tpu.memory_space<vmem>>, vector<1x8x4xf32>
    %4 = vector.shape_cast %3 : vector<1x8x4xf32> to vector<8x4xf32>
    %cst = arith.constant dense<0.000000e+00> : vector<8x384xf32>
    %5 = tpu.matmul %4, %2, %cst {dimension_numbers = #tpu.dot_dimension_numbers<[1], [0], [0], [1], [0, 0, 1, 1], [], []>} : vector<8x4xf32>, vector<4x384xf32>, vector<8x384xf32> -> vector<8x384xf32>
    %6 = arith.addf %0, %5 : vector<8x384xf32>
    %c0_7 = arith.constant 0 : index
    %c0_8 = arith.constant 0 : index
    %c1 = arith.constant 1 : index
    %7 = vector.load %arg3[%c0_7, %c0_8, %c1] : memref<1x4x512xf32, #tpu.memory_space<vmem>>, vector<1x4x384xf32>
    %8 = vector.shape_cast %7 : vector<1x4x384xf32> to vector<4x384xf32>
    %c1_9 = arith.constant 1 : index
    %c0_10 = arith.constant 0 : index
    %c0_11 = arith.constant 0 : index
    %9 = vector.load %arg1[%c1_9, %c0_10, %c0_11] : memref<9x8x4xf32, #tpu.memory_space<vmem>>, vector<1x8x4xf32>
    %10 = vector.shape_cast %9 : vector<1x8x4xf32> to vector<8x4xf32>
    %cst_12 = arith.constant dense<0.000000e+00> : vector<8x384xf32>
    %11 = tpu.matmul %10, %8, %cst_12 {dimension_numbers = #tpu.dot_dimension_numbers<[1], [0], [0], [1], [0, 0, 1, 1], [], []>} : vector<8x4xf32>, vector<4x384xf32>, vector<8x384xf32> -> vector<8x384xf32>
    %12 = arith.addf %6, %11 : vector<8x384xf32>
    %c0_13 = arith.constant 0 : index
    %c0_14 = arith.constant 0 : index
    %c2 = arith.constant 2 : index
    %13 = vector.load %arg3[%c0_13, %c0_14, %c2] : memref<1x4x512xf32, #tpu.memory_space<vmem>>, vector<1x4x384xf32>
    %14 = vector.shape_cast %13 : vector<1x4x384xf32> to vector<4x384xf32>
    %c2_15 = arith.constant 2 : index
    %c0_16 = arith.constant 0 : index
    %c0_17 = arith.constant 0 : index
    %15 = vector.load %arg1[%c2_15, %c0_16, %c0_17] : memref<9x8x4xf32, #tpu.memory_space<vmem>>, vector<1x8x4xf32>
    %16 = vector.shape_cast %15 : vector<1x8x4xf32> to vector<8x4xf32>
    %cst_18 = arith.constant dense<0.000000e+00> : vector<8x384xf32>
    %17 = tpu.matmul %16, %14, %cst_18 {dimension_numbers = #tpu.dot_dimension_numbers<[1], [0], [0], [1], [0, 0, 1, 1], [], []>} : vector<8x4xf32>, vector<4x384xf32>, vector<8x384xf32> -> vector<8x384xf32>
    %18 = arith.addf %12, %17 : vector<8x384xf32>
    %c0_19 = arith.constant 0 : index
    %c0_20 = arith.constant 0 : index
    %c18 = arith.constant 18 : index
    %19 = vector.load %arg3[%c0_19, %c0_20, %c18] : memref<1x4x512xf32, #tpu.memory_space<vmem>>, vector<1x4x384xf32>
    %20 = vector.shape_cast %19 : vector<1x4x384xf32> to vector<4x384xf32>
    %c3 = arith.constant 3 : index
    %c0_21 = arith.constant 0 : index
    %c0_22 = arith.constant 0 : index
    %21 = vector.load %arg1[%c3, %c0_21, %c0_22] : memref<9x8x4xf32, #tpu.memory_space<vmem>>, vector<1x8x4xf32>
    %22 = vector.shape_cast %21 : vector<1x8x4xf32> to vector<8x4xf32>
    %cst_23 = arith.constant dense<0.000000e+00> : vector<8x384xf32>
    %23 = tpu.matmul %22, %20, %cst_23 {dimension_numbers = #tpu.dot_dimension_numbers<[1], [0], [0], [1], [0, 0, 1, 1], [], []>} : vector<8x4xf32>, vector<4x384xf32>, vector<8x384xf32> -> vector<8x384xf32>
    %24 = arith.addf %18, %23 : vector<8x384xf32>
    %c0_24 = arith.constant 0 : index
    %c0_25 = arith.constant 0 : index
    %c19 = arith.constant 19 : index
    %25 = vector.load %arg3[%c0_24, %c0_25, %c19] : memref<1x4x512xf32, #tpu.memory_space<vmem>>, vector<1x4x384xf32>
    %26 = vector.shape_cast %25 : vector<1x4x384xf32> to vector<4x384xf32>
    %c4 = arith.constant 4 : index
    %c0_26 = arith.constant 0 : index
    %c0_27 = arith.constant 0 : index
    %27 = vector.load %arg1[%c4, %c0_26, %c0_27] : memref<9x8x4xf32, #tpu.memory_space<vmem>>, vector<1x8x4xf32>
    %28 = vector.shape_cast %27 : vector<1x8x4xf32> to vector<8x4xf32>
    %cst_28 = arith.constant dense<0.000000e+00> : vector<8x384xf32>
    %29 = tpu.matmul %28, %26, %cst_28 {dimension_numbers = #tpu.dot_dimension_numbers<[1], [0], [0], [1], [0, 0, 1, 1], [], []>} : vector<8x4xf32>, vector<4x384xf32>, vector<8x384xf32> -> vector<8x384xf32>
    %30 = arith.addf %24, %29 : vector<8x384xf32>
    %c0_29 = arith.constant 0 : index
    %c0_30 = arith.constant 0 : index
    %c20 = arith.constant 20 : index
    %31 = vector.load %arg3[%c0_29, %c0_30, %c20] : memref<1x4x512xf32, #tpu.memory_space<vmem>>, vector<1x4x384xf32>
    %32 = vector.shape_cast %31 : vector<1x4x384xf32> to vector<4x384xf32>
    %c5 = arith.constant 5 : index
    %c0_31 = arith.constant 0 : index
    %c0_32 = arith.constant 0 : index
    %33 = vector.load %arg1[%c5, %c0_31, %c0_32] : memref<9x8x4xf32, #tpu.memory_space<vmem>>, vector<1x8x4xf32>
    %34 = vector.shape_cast %33 : vector<1x8x4xf32> to vector<8x4xf32>
    %cst_33 = arith.constant dense<0.000000e+00> : vector<8x384xf32>
    %35 = tpu.matmul %34, %32, %cst_33 {dimension_numbers = #tpu.dot_dimension_numbers<[1], [0], [0], [1], [0, 0, 1, 1], [], []>} : vector<8x4xf32>, vector<4x384xf32>, vector<8x384xf32> -> vector<8x384xf32>
    %36 = arith.addf %30, %35 : vector<8x384xf32>
    %c0_34 = arith.constant 0 : index
    %c0_35 = arith.constant 0 : index
    %c36 = arith.constant 36 : index
    %37 = vector.load %arg3[%c0_34, %c0_35, %c36] : memref<1x4x512xf32, #tpu.memory_space<vmem>>, vector<1x4x384xf32>
    %38 = vector.shape_cast %37 : vector<1x4x384xf32> to vector<4x384xf32>
    %c6 = arith.constant 6 : index
    %c0_36 = arith.constant 0 : index
    %c0_37 = arith.constant 0 : index
    %39 = vector.load %arg1[%c6, %c0_36, %c0_37] : memref<9x8x4xf32, #tpu.memory_space<vmem>>, vector<1x8x4xf32>
    %40 = vector.shape_cast %39 : vector<1x8x4xf32> to vector<8x4xf32>
    %cst_38 = arith.constant dense<0.000000e+00> : vector<8x384xf32>
    %41 = tpu.matmul %40, %38, %cst_38 {dimension_numbers = #tpu.dot_dimension_numbers<[1], [0], [0], [1], [0, 0, 1, 1], [], []>} : vector<8x4xf32>, vector<4x384xf32>, vector<8x384xf32> -> vector<8x384xf32>
    %42 = arith.addf %36, %41 : vector<8x384xf32>
    %c0_39 = arith.constant 0 : index
    %c0_40 = arith.constant 0 : index
    %c37 = arith.constant 37 : index
    %43 = vector.load %arg3[%c0_39, %c0_40, %c37] : memref<1x4x512xf32, #tpu.memory_space<vmem>>, vector<1x4x384xf32>
    %44 = vector.shape_cast %43 : vector<1x4x384xf32> to vector<4x384xf32>
    %c7 = arith.constant 7 : index
    %c0_41 = arith.constant 0 : index
    %c0_42 = arith.constant 0 : index
    %45 = vector.load %arg1[%c7, %c0_41, %c0_42] : memref<9x8x4xf32, #tpu.memory_space<vmem>>, vector<1x8x4xf32>
    %46 = vector.shape_cast %45 : vector<1x8x4xf32> to vector<8x4xf32>
    %cst_43 = arith.constant dense<0.000000e+00> : vector<8x384xf32>
    %47 = tpu.matmul %46, %44, %cst_43 {dimension_numbers = #tpu.dot_dimension_numbers<[1], [0], [0], [1], [0, 0, 1, 1], [], []>} : vector<8x4xf32>, vector<4x384xf32>, vector<8x384xf32> -> vector<8x384xf32>
    %48 = arith.addf %42, %47 : vector<8x384xf32>
    %c0_44 = arith.constant 0 : index
    %c0_45 = arith.constant 0 : index
    %c38 = arith.constant 38 : index
    %49 = vector.load %arg3[%c0_44, %c0_45, %c38] : memref<1x4x512xf32, #tpu.memory_space<vmem>>, vector<1x4x384xf32>
    %50 = vector.shape_cast %49 : vector<1x4x384xf32> to vector<4x384xf32>
    %c8 = arith.constant 8 : index
    %c0_46 = arith.constant 0 : index
    %c0_47 = arith.constant 0 : index
    %51 = vector.load %arg1[%c8, %c0_46, %c0_47] : memref<9x8x4xf32, #tpu.memory_space<vmem>>, vector<1x8x4xf32>
    %52 = vector.shape_cast %51 : vector<1x8x4xf32> to vector<8x4xf32>
    %cst_48 = arith.constant dense<0.000000e+00> : vector<8x384xf32>
    %53 = tpu.matmul %52, %50, %cst_48 {dimension_numbers = #tpu.dot_dimension_numbers<[1], [0], [0], [1], [0, 0, 1, 1], [], []>} : vector<8x4xf32>, vector<4x384xf32>, vector<8x384xf32> -> vector<8x384xf32>
    %54 = arith.addf %48, %53 : vector<8x384xf32>
    %c0_49 = arith.constant 0 : index
    %c0_50 = arith.constant 0 : index
    %c0_51 = arith.constant 0 : index
    %55 = vector.load %arg4[%c0_49, %c0_50, %c0_51] : memref<1x8x384xf32, #tpu.memory_space<vmem>>, vector<1x8x384xf32>
    %56 = vector.shape_cast %55 : vector<1x8x384xf32> to vector<8x384xf32>
    %57 = vector.shape_cast %54 : vector<8x384xf32> to vector<1x8x384xf32>
    tpu.vector_store %arg4[%c0_49, %c0_50, %c0_51], %57 {strides = array<i32>} : memref<1x8x384xf32, #tpu.memory_space<vmem>>, vector<1x8x384xf32>,
    return
  }
  func.func @transform_0(%arg0: i32) -> (i32, i32, i32) {
    %c0_i32 = arith.constant 0 : i32
    %c0_i32_0 = arith.constant 0 : i32
    %c0_i32_1 = arith.constant 0 : i32
    %c0_i32_2 = arith.constant 0 : i32
    return %c0_i32, %c0_i32_0, %c0_i32_1 : i32, i32, i32
  }
  func.func @transform_1(%arg0: i32) -> (i32, i32) {
    %c0_i32 = arith.constant 0 : i32
    %c0_i32_0 = arith.constant 0 : i32
    %c0_i32_1 = arith.constant 0 : i32
    return %c0_i32, %c0_i32_0 : i32, i32
  }
  func.func @transform_2(%arg0: i32) -> (i32, i32, i32) {
    %c0_i32 = arith.constant 0 : i32
    %c0_i32_0 = arith.constant 0 : i32
    %c0_i32_1 = arith.constant 0 : i32
    return %arg0, %c0_i32, %c0_i32_0 : i32, i32, i32
  }
  func.func @transform_3(%arg0: i32) -> (i32, i32, i32) {
    %c0_i32 = arith.constant 0 : i32
    %c0_i32_0 = arith.constant 0 : i32
    %c0_i32_1 = arith.constant 0 : i32
    return %arg0, %c0_i32, %c0_i32_0 : i32, i32, i32
  }
}

</mosaic_0001>

<bundles_post_ra>
// kernel: tpu_custom_call.1
= control target key start
LH: loop header
LB: loop body
LE: loop exit
PB: predicated region body
PF: predicated region fallthrough
CT: control target
= control target key end

     0   :  { %8 = vsyncpa [#allocation3], 0  ;;  %s2320_s0 = inlined_call_operand.vmem [shape: f32[9,8,4], index: 0, kind: input, shape index: {}]   ;;  %s2321_s1 = inlined_call_operand.vmem [shape: f32[8,384], index: 1, kind: input, shape index: {}]   ;;  %s2322_s2 = inlined_call_operand.vmem [shape: f32[2,4,512], index: 2, kind: input, shape index: {}]   ;;  %s2323_s3 = inlined_call_operand.hbm [shape: f32[2,8,384], index: 3, kind: output, shape index: {}]  }
   0x1   :  { %10 = vsyncpa [#allocation3 + $0x1], 0  ;;  %s2103_s12 = smov 0   ;;  %s2105_s13 = smov 0  }
   0x2   :  { %s2107_s14 = smov 0   ;;  %s2109_s15 = smov 0  }
   0x3 LB: > { %s2124_s16 = sadd.s32 4294967295, %s2070_s15   ;;  %s1794_s17 = sadd.s32 4294967294, %s2070_s15   ;;  %s2070_s15 = sphi %s2109_s15, %s2329_s15   ;;  %s2066_s14 = sphi %s2107_s14, %s2328_s14   ;;  %s2062_s13 = sphi %s2105_s13, %s2327_s13   ;;  %s2058_s12 = sphi %s2103_s12, %s2326_s12  }
   0x4   : > { %s2128_s18 = sadd.s32 1, %s2070_s15   ;;  %s91_s19 = sadd.s32 1, %s2066_s14 }
   0x5   : > { %s88_s20 = ssub.s32 %s2070_s15, %s2128_s18  ;;  %p101_p0 = scmp.ne.s32.totalorder %s2066_s14, %s2062_s13 }
   0x6   : > { %p89_p1 = scmp.eq.s32.totalorder %s88_s20, 0  ;;  %p102_p2 = scmp.eq.s32.totalorder %s2124_s16, 1 }
   0x7   : > { %p107_p3 = scmp.ne.s32.totalorder %s2062_s13, %s2058_s12  ;;  %p108_p4 = scmp.eq.s32.totalorder %s1794_s17, 1 }
   0x8   : > { %s2139_s21 = scalar_select %p89_p1, %s2066_s14, %s91_s19  }
   0x9   : > { %p2141_p5 = por %p102_p2, %p101_p0  ;;  %p2145_p6 = por %p108_p4, %p107_p3 }
   0xa   : > { %p1797_p7 = scmp.ge.s32.totalorder %s2070_s15, 1  ;;  %p140_p8 = scmp.lt.s32.totalorder %s2070_s15, 3 }
   0xc   : > { %p141_p9 = pnand %p1797_p7, %p140_p8 }
   0xd   : > { %p164_p10 = scmp.lt.s32.totalorder (!%p141_p9), %s2124_s16, 1  ;;  %v2072_v0 = vmov (!%p141_p9), 0.0   ;;  %vm2073_vm0 = vmmov (!%p141_p9), 0   ;;  %vm182_vm1 = vcmask (!%p141_p9), 1043456   ;;  %v174_v1 = vld [vmem:[%s2320_s0] sm:$0xff] (!%p141_p9)  ;;  %vm178_vm2 = vcmask (!%p141_p9), 31744  }
   0xe   : > { %144 = sbr.rel (%p141_p9) target bundleno = 436 (0x1b4), region = 32  ;;  %1875 = vmatprep.subr.mxu1 (!%p141_p9), %v2072_v0  ;;  %1877 = vmatprep.mubr.msk.f32.mxu1 (!%p141_p9), %vm2073_vm0, %v2072_v0  ;;  %s2074_s4 = smov (!%p141_p9), 127   ;;  %vm349_vm3 = vcmask (!%p141_p9), 1039360   ;;  %v1805_v11 = vld [vmem:[%s2320_s0 + $0x8] sm:$0xff] (!%p141_p9)  ;;  %vm522_vm4 = vcmask (!%p141_p9), 1031168   ;;  %v1811_v21 = vld [vmem:[%s2320_s0 + $0x10] sm:$0xff] (!%p141_p9) }
   0xf   : > { %253 = vmatprep.mubr.f32.mxu0 (!%p141_p9), %v2072_v0  ;;  %s2075_s5 = smov (!%p141_p9), 126   ;;  %s2076_s6 = smov (!%p141_p9), 110   ;;  %vm695_vm5 = vcmask (!%p141_p9), 900096   ;;  %v1817_v29 = vld [vmem:[%s2320_s0 + $0x18] sm:$0xff] (!%p141_p9)  ;;  %vm868_vm6 = vcmask (!%p141_p9), 891904   ;;  %v1823_v37 = vld [vmem:[%s2320_s0 + $0x20] sm:$0xff] (!%p141_p9) }
  0x10   : > { %s2077_s7 = smov (!%p141_p9), 109   ;;  %s2078_s8 = smov (!%p141_p9), 108   ;;  %vm1041_vm7 = vcmask (!%p141_p9), 883712   ;;  %v1829_v45 = vld [vmem:[%s2320_s0 + $0x28] sm:$0xff] (!%p141_p9)  ;;  %vm1214_vm8 = vcmask (!%p141_p9), 752640   ;;  %v1835_v53 = vld [vmem:[%s2320_s0 + $0x30] sm:$0xff] (!%p141_p9) }
  0x11   : > { %s2079_s9 = smov (!%p141_p9), 92   ;;  %s2080_s10 = smov (!%p141_p9), 91   ;;  %vm1387_vm9 = vcmask (!%p141_p9), 744448   ;;  %v1841_v61 = vld [vmem:[%s2320_s0 + $0x38] sm:$0xff] (!%p141_p9)  ;;  %vm1560_vm10 = vcmask (!%p141_p9), 736256  }
  0x12   : > { %s2081_s11 = smov (!%p141_p9), 90  }
  0x15   : > { %s165_s24 = scalar_select %p164_p10, %s2124_s16, 1 }
  0x17   : > { %s1856_s25 = sshll.u32 %s165_s24, 4 }
  0x18   : > { %s168_s28 = scalar_lea.vmem %s2322_s2, %s1856_s25  ;;  %s1956_s25 = smul.u32 384, %s2124_s16 }
  0x19   : > { %v333_v2 = vld [vmem:[%s168_s28] sm:$0xff]  ;;  %v334_v3 = vld [vmem:[%s168_s28 + $0x8] sm:$0xff] }
  0x1a   : > { %v173_v4 = vld [vmem:[%s168_s28 + $0x8] sm:$0xf]  ;;  %341 = vrot.lane.b32.xlu1 %v333_v2, %s2074_s4  ;;  %v339_v5 = vcombine.high %v333_v2, %v333_v2  ;;  %v340_v6 = vcombine.high %v334_v3, %v334_v3 }
  0x1b   : > { %1876 = vmatpush3.msk.msra.mxu1 %vm182_vm1, %v173_v4 }
  0x1c   : > { %1878 = vmatmul.mubr.msk.f32.vlgmr.msra.gmra.mrb[0].mxu1 %vm178_vm2, %v174_v1  ;;  %1880 = vmatprep.subr.mxu1 %v2072_v0 }
  0x1d   : > { %343 = vrot.lane.b32.xlu0 %v339_v5, %s2074_s4  ;;  %1800 = vmatprep.subr.msk.mxu0 %vm182_vm1, %v339_v5 }
  0x1e   : > { %1801 = vmatpush1.msk.msra.mxu0 %vm182_vm1, %v333_v2  ;;  %1882 = vmatprep.mubr.msk.f32.mxu1 %vm2073_vm0, %v2072_v0 }
  0x1f   : > { %347 = vrot.lane.b32.xlu1 %v340_v6, %s2074_s4  ;;  %1802 = vmatmul.mubr.msk.f32.vlgmr.msra.gmra.mrb[0].mxu0 %vm178_vm2, %v174_v1 }
  0x20   : > { %426 = vmatprep.mubr.f32.mxu0 %v2072_v0 }
  0x21   : > { %345 = vrot.lane.b32.xlu0 %v334_v3, %s2074_s4 }
  0x23   : > { %518 = vrot.lane.b32.xlu1 %v334_v3, %s2075_s5 }
  0x25   : > { %516 = vrot.lane.b32.xlu0 %v339_v5, %s2075_s5 }
  0x27   : > { %520 = vrot.lane.b32.xlu1 %v340_v6, %s2075_s5 }
  0x29   : > { %514 = vrot.lane.b32.xlu0 %v333_v2, %s2075_s5  ;;  %s2278_s5 = scalar_lea.hbm %s2323_s3, %s1956_s25 }
  0x2b   : > { %691 = vrot.lane.b32.xlu1 %v334_v3, %s2076_s6 }
  0x2d   : > { %689 = vrot.lane.b32.xlu0 %v339_v5, %s2076_s6 }
  0x2f   : > { %693 = vrot.lane.b32.xlu1 %v340_v6, %s2076_s6 }
  0x31   : > { %687 = vrot.lane.b32.xlu0 %v333_v2, %s2076_s6 }
  0x33   : > { %864 = vrot.lane.b32.xlu1 %v334_v3, %s2077_s7 }
  0x35   : > { %862 = vrot.lane.b32.xlu0 %v339_v5, %s2077_s7 }
  0x37   : > { %866 = vrot.lane.b32.xlu1 %v340_v6, %s2077_s7 }
  0x39   : > { %860 = vrot.lane.b32.xlu0 %v333_v2, %s2077_s7  ;;  %s2082_s7 = smov [#allocation2]  }
  0x3b   : > { %1037 = vrot.lane.b32.xlu1 %v334_v3, %s2078_s8 }
  0x3d   : > { %1035 = vrot.lane.b32.xlu0 %v339_v5, %s2078_s8 }
  0x3f   : > { %1039 = vrot.lane.b32.xlu1 %v340_v6, %s2078_s8 }
  0x41   : > { %1033 = vrot.lane.b32.xlu0 %v333_v2, %s2078_s8  ;;  %s2012_s8 = sshll.u32 %s2082_s7, 4  ;;  %s2013_s8 = int_to_ptr.vmem [resolvable:$false] %s2012_s8 }
  0x43   : > { %1210 = vrot.lane.b32.xlu1 %v334_v3, %s2079_s9 }
  0x45   : > { %1208 = vrot.lane.b32.xlu0 %v339_v5, %s2079_s9 }
  0x47   : > { %1212 = vrot.lane.b32.xlu1 %v340_v6, %s2079_s9 }
  0x49   : > { %1206 = vrot.lane.b32.xlu0 %v333_v2, %s2079_s9  ;;  %s2014_s9 = scalar_lea.vmem %s2013_s8, 768 }
  0x4b   : > { %1383 = vrot.lane.b32.xlu1 %v334_v3, %s2080_s10 }
  0x4d   : > { %1381 = vrot.lane.b32.xlu0 %v339_v5, %s2080_s10 }
  0x4f   : > { %1385 = vrot.lane.b32.xlu1 %v340_v6, %s2080_s10 }
  0x51   : > { %1379 = vrot.lane.b32.xlu0 %v333_v2, %s2080_s10  ;;  %s161_s10 = sand.u32 1, %s2062_s13  }
  0x52   : > { %s1721_s16 = scalar_lea.sflag [#allocation3], %s161_s10 }
  0x53   : > { %1556 = vrot.lane.b32.xlu1 %v334_v3, %s2081_s11 }
  0x55   : > { %1554 = vrot.lane.b32.xlu0 %v339_v5, %s2081_s11 }
  0x57   : > { %1558 = vrot.lane.b32.xlu1 %v340_v6, %s2081_s11  ;;  %v1847_v6 = vld [vmem:[%s2320_s0 + $0x40] sm:$0xff] }
  0x59   : > { %1552 = vrot.lane.b32.xlu0 %v333_v2, %s2081_s11  ;;  %s1955_s11 = smul.u32 24, %s161_s10 }
  0x5b   : > { %s163_s28 = scalar_lea.vmem [#allocation2], %s1955_s11 }
  0x5c   : > { %s1735_s29 = sshll.u32 %s163_s28, 4  ;;  %s2280_s29 = int_to_ptr.vmem [resolvable:$true] %s1735_s29 }
  0x5d   : > { %s2008_s6 = scalar_lea.vmem %s2280_s29, 384  ;;  %p2015_p0 = scmp.lt.s32.totalorder %s2280_s29, %s2013_s8 }
  0x5e   : > { %p2009_p11 = scmp.ne.s32.totalorder %s2280_s29, %s2008_s6  ;;  %p2016_p1 = scmp.lt.s32.totalorder %s2014_s9, %s2008_s6 }
  0x60   : > { %p2010_p12 = pnand %p2009_p11, %p2141_p5  ;;  %p2017_p2 = por %p2016_p1, %p2015_p0 }
  0x62   : > { %p2011_p13 = pneg %p2010_p12 }
  0x64   : > { %p2018_p3 = pnand %p2017_p2, %p2011_p13 }
  0x8c   : > { %v342_v7 = vpop.permute.xlu1 %341 }
  0x8f   : > { %v344_v8 = vpop.permute.xlu0 %343 }
  0x90   : > { %v350_v14 = vsel %vm349_vm3, %v342_v7, %v344_v8 }
  0x91   : > { %v348_v9 = vpop.permute.xlu1 %347 }
  0x93   : > { %v346_v10 = vpop.permute.xlu0 %345 }
  0x94   : > { %v351_v12 = vsel %vm349_vm3, %v344_v8, %v346_v10  ;;  %v352_v13 = vsel %vm349_vm3, %v346_v10, %v348_v9  ;;  %v169_v8 = vld [vmem:[%s2321_s1] sm:$0xff]  ;;  %v170_v10 = vld [vmem:[%s2321_s1 + $0x8] sm:$0xff] }
  0x95   : > { %v519_v15 = vpop.permute.xlu1 %518  ;;  %1806 = vmatprep.subr.msk.mxu0 %vm182_vm1, %v351_v12  ;;  %1881 = vmatpush3.msk.msra.mxu1 %vm182_vm1, %v352_v13 }
  0x96   : > { %1807 = vmatpush1.msk.msra.mxu0 %vm182_vm1, %v350_v14  ;;  %1883 = vmatmul.mubr.msk.f32.vlgmr.msra.gmra.mrb[0].mxu1 %vm178_vm2, %v1805_v11 }
  0x97   : > { %v517_v16 = vpop.permute.xlu0 %516  ;;  %1808 = vmatmul.mubr.msk.f32.vlgmr.msra.gmra.mrb[0].mxu0 %vm178_vm2, %v1805_v11  ;;  %1885 = vmatprep.subr.mxu1 %v2072_v0 }
  0x98   : > { %v524_v17 = vsel %vm522_vm4, %v517_v16, %v519_v15  ;;  %1887 = vmatprep.mubr.msk.f32.mxu1 %vm2073_vm0, %v2072_v0  ;;  %599 = vmatprep.mubr.f32.mxu0 %v2072_v0 }
  0x99   : > { %v521_v18 = vpop.permute.xlu1 %520  ;;  %1812 = vmatprep.subr.msk.mxu0 %vm182_vm1, %v524_v17 }
  0x9a   : > { %v525_v19 = vsel %vm522_vm4, %v519_v15, %v521_v18 }
  0x9b   : > { %v515_v20 = vpop.permute.xlu0 %514  ;;  %1886 = vmatpush3.msk.msra.mxu1 %vm182_vm1, %v525_v19 }
  0x9c   : > { %v523_v22 = vsel %vm522_vm4, %v515_v20, %v517_v16  ;;  %1890 = vmatprep.subr.mxu1 %v2072_v0 }
  0x9d   : > { %v692_v23 = vpop.permute.xlu1 %691  ;;  %1813 = vmatpush1.msk.msra.mxu0 %vm182_vm1, %v523_v22 }
  0x9e   : > { %1888 = vmatmul.mubr.msk.f32.vlgmr.msra.gmra.mrb[0].mxu1 %vm178_vm2, %v1811_v21 }
  0x9f   : > { %v690_v24 = vpop.permute.xlu0 %689  ;;  %1814 = vmatmul.mubr.msk.f32.vlgmr.msra.gmra.mrb[0].mxu0 %vm178_vm2, %v1811_v21  ;;  %1892 = vmatprep.mubr.msk.f32.mxu1 %vm2073_vm0, %v2072_v0 }
  0xa0   : > { %v697_v25 = vsel %vm695_vm5, %v690_v24, %v692_v23  ;;  %772 = vmatprep.mubr.f32.mxu0 %v2072_v0 }
  0xa1   : > { %v694_v26 = vpop.permute.xlu1 %693  ;;  %1818 = vmatprep.subr.msk.mxu0 %vm182_vm1, %v697_v25 }
  0xa2   : > { %v698_v27 = vsel %vm695_vm5, %v692_v23, %v694_v26 }
  0xa3   : > { %v688_v28 = vpop.permute.xlu0 %687  ;;  %1891 = vmatpush3.msk.msra.mxu1 %vm182_vm1, %v698_v27 }
  0xa4   : > { %v696_v30 = vsel %vm695_vm5, %v688_v28, %v690_v24  ;;  %1895 = vmatprep.subr.mxu1 %v2072_v0 }
  0xa5   : > { %v865_v31 = vpop.permute.xlu1 %864  ;;  %1819 = vmatpush1.msk.msra.mxu0 %vm182_vm1, %v696_v30 }
  0xa6   : > { %1893 = vmatmul.mubr.msk.f32.vlgmr.msra.gmra.mrb[0].mxu1 %vm178_vm2, %v1817_v29 }
  0xa7   : > { %v863_v32 = vpop.permute.xlu0 %862  ;;  %1820 = vmatmul.mubr.msk.f32.vlgmr.msra.gmra.mrb[0].mxu0 %vm178_vm2, %v1817_v29  ;;  %1897 = vmatprep.mubr.msk.f32.mxu1 %vm2073_vm0, %v2072_v0 }
  0xa8   : > { %v870_v33 = vsel %vm868_vm6, %v863_v32, %v865_v31  ;;  %945 = vmatprep.mubr.f32.mxu0 %v2072_v0 }
  0xa9   : > { %v867_v34 = vpop.permute.xlu1 %866  ;;  %1824 = vmatprep.subr.msk.mxu0 %vm182_vm1, %v870_v33 }
  0xaa   : > { %v871_v35 = vsel %vm868_vm6, %v865_v31, %v867_v34 }
  0xab   : > { %v861_v36 = vpop.permute.xlu0 %860  ;;  %1896 = vmatpush3.msk.msra.mxu1 %vm182_vm1, %v871_v35 }
  0xac   : > { %v869_v38 = vsel %vm868_vm6, %v861_v36, %v863_v32  ;;  %1900 = vmatprep.subr.mxu1 %v2072_v0 }
  0xad   : > { %v1038_v39 = vpop.permute.xlu1 %1037  ;;  %1825 = vmatpush1.msk.msra.mxu0 %vm182_vm1, %v869_v38 }
  0xae   : > { %1898 = vmatmul.mubr.msk.f32.vlgmr.msra.gmra.mrb[0].mxu1 %vm178_vm2, %v1823_v37 }
  0xaf   : > { %v1036_v40 = vpop.permute.xlu0 %1035  ;;  %1826 = vmatmul.mubr.msk.f32.vlgmr.msra.gmra.mrb[0].mxu0 %vm178_vm2, %v1823_v37  ;;  %1902 = vmatprep.mubr.msk.f32.mxu1 %vm2073_vm0, %v2072_v0 }
  0xb0   : > { %v1043_v41 = vsel %vm1041_vm7, %v1036_v40, %v1038_v39  ;;  %1118 = vmatprep.mubr.f32.mxu0 %v2072_v0 }
  0xb1   : > { %v1040_v42 = vpop.permute.xlu1 %1039  ;;  %1830 = vmatprep.subr.msk.mxu0 %vm182_vm1, %v1043_v41 }
  0xb2   : > { %v1044_v43 = vsel %vm1041_vm7, %v1038_v39, %v1040_v42 }
  0xb3   : > { %v1034_v44 = vpop.permute.xlu0 %1033  ;;  %1901 = vmatpush3.msk.msra.mxu1 %vm182_vm1, %v1044_v43 }
  0xb4   : > { %v1042_v46 = vsel %vm1041_vm7, %v1034_v44, %v1036_v40  ;;  %1905 = vmatprep.subr.mxu1 %v2072_v0 }
  0xb5   : > { %v1211_v47 = vpop.permute.xlu1 %1210  ;;  %1831 = vmatpush1.msk.msra.mxu0 %vm182_vm1, %v1042_v46 }
  0xb6   : > { %1903 = vmatmul.mubr.msk.f32.vlgmr.msra.gmra.mrb[0].mxu1 %vm178_vm2, %v1829_v45 }
  0xb7   : > { %v1209_v48 = vpop.permute.xlu0 %1208  ;;  %1832 = vmatmul.mubr.msk.f32.vlgmr.msra.gmra.mrb[0].mxu0 %vm178_vm2, %v1829_v45  ;;  %1907 = vmatprep.mubr.msk.f32.mxu1 %vm2073_vm0, %v2072_v0 }
  0xb8   : > { %v1216_v49 = vsel %vm1214_vm8, %v1209_v48, %v1211_v47  ;;  %1291 = vmatprep.mubr.f32.mxu0 %v2072_v0 }
  0xb9   : > { %v1213_v50 = vpop.permute.xlu1 %1212  ;;  %1836 = vmatprep.subr.msk.mxu0 %vm182_vm1, %v1216_v49 }
  0xba   : > { %v1217_v51 = vsel %vm1214_vm8, %v1211_v47, %v1213_v50 }
  0xbb   : > { %v1207_v52 = vpop.permute.xlu0 %1206  ;;  %1906 = vmatpush3.msk.msra.mxu1 %vm182_vm1, %v1217_v51 }
  0xbc   : > { %v1215_v54 = vsel %vm1214_vm8, %v1207_v52, %v1209_v48  ;;  %1910 = vmatprep.subr.mxu1 %v2072_v0 }
  0xbd   : > { %v1384_v55 = vpop.permute.xlu1 %1383  ;;  %1837 = vmatpush1.msk.msra.mxu0 %vm182_vm1, %v1215_v54 }
  0xbe   : > { %1908 = vmatmul.mubr.msk.f32.vlgmr.msra.gmra.mrb[0].mxu1 %vm178_vm2, %v1835_v53 }
  0xbf   : > { %v1382_v56 = vpop.permute.xlu0 %1381  ;;  %1838 = vmatmul.mubr.msk.f32.vlgmr.msra.gmra.mrb[0].mxu0 %vm178_vm2, %v1835_v53  ;;  %1912 = vmatprep.mubr.msk.f32.mxu1 %vm2073_vm0, %v2072_v0 }
  0xc0   : > { %v1389_v57 = vsel %vm1387_vm9, %v1382_v56, %v1384_v55  ;;  %1464 = vmatprep.mubr.f32.mxu0 %v2072_v0 }
  0xc1   : > { %v1386_v58 = vpop.permute.xlu1 %1385  ;;  %1842 = vmatprep.subr.msk.mxu0 %vm182_vm1, %v1389_v57 }
  0xc2   : > { %v1390_v59 = vsel %vm1387_vm9, %v1384_v55, %v1386_v58 }
  0xc3   : > { %v1380_v60 = vpop.permute.xlu0 %1379  ;;  %1911 = vmatpush3.msk.msra.mxu1 %vm182_vm1, %v1390_v59 }
  0xc4   : > { %v1388_v62 = vsel %vm1387_vm9, %v1380_v60, %v1382_v56  ;;  %1915 = vmatprep.subr.mxu1 %v2072_v0 }
  0xc5   : > { %v1557_v63 = vpop.permute.xlu1 %1556  ;;  %1843 = vmatpush1.msk.msra.mxu0 %vm182_vm1, %v1388_v62 }
  0xc6   : > { %1913 = vmatmul.mubr.msk.f32.vlgmr.msra.gmra.mrb[0].mxu1 %vm178_vm2, %v1841_v61 }
  0xc7   : > { %v1555_v1 = vpop.permute.xlu0 %1554  ;;  %1844 = vmatmul.mubr.msk.f32.vlgmr.msra.gmra.mrb[0].mxu0 %vm178_vm2, %v1841_v61  ;;  %1917 = vmatprep.mubr.msk.f32.mxu1 %vm2073_vm0, %v2072_v0 }
  0xc8   : > { %v1562_v2 = vsel %vm1560_vm10, %v1555_v1, %v1557_v63  ;;  %1637 = vmatprep.mubr.f32.mxu0 %v2072_v0  ;;  %v171_v0 = vld [vmem:[%s2321_s1 + $0x10] sm:$0xff] }
  0xc9   : > { %v1559_v3 = vpop.permute.xlu1 %1558  ;;  %1848 = vmatprep.subr.msk.mxu0 %vm182_vm1, %v1562_v2 }
  0xca   : > { %v1563_v4 = vsel %vm1560_vm10, %v1557_v63, %v1559_v3 }
  0xcb   : > { %v1553_v5 = vpop.permute.xlu0 %1552  ;;  %1916 = vmatpush3.msk.msra.mxu1 %vm182_vm1, %v1563_v4 }
  0xcc   : > { %v1561_v7 = vsel %vm1560_vm10, %v1553_v5, %v1555_v1 }
  0xcd   : > { %1849 = vmatpush1.msk.msra.mxu0 %vm182_vm1, %v1561_v7 }
  0xce   : > { %1918 = vmatmul.mubr.msk.f32.vlgmr.msra.gmra.mrb[0].mxu1 %vm178_vm2, %v1847_v6 }
  0xcf   : > { %1850 = vmatmul.mubr.msk.f32.vlgmr.msra.gmra.mrb[0].mxu0 %vm178_vm2, %v1847_v6 }
 0x1a1   : > { %v1710_v9 = vpop.f32.mrb[0].mxu1 }
 0x1a2   : > { %v1922_v11 = vadd.f32 %v1710_v9, %v171_v0  ;;  %v1639_v12 = vpop.f32.mrb[0].mxu0  ;;  %v1919_v13 = vpop.f32.mrb[1].mxu1 }
 0x1a3   : > { %v1920_v14 = vadd.f32 %v1639_v12, %v169_v8  ;;  %v1641_v15 = vpop.f32.mrb[1].mxu0 }
 0x1a4   : > { %1719 = vst [vmem:[%s163_s28 + $0x10] sm:$0xff] %v1922_v11  ;;  %v1921_v16 = vadd.f32 %v1641_v15, %v170_v10 }
 0x1a5   : > { %1717 = vst [vmem:[%s163_s28] sm:$0xff] %v1920_v14 }
 0x1a6   : > { %1718 = vst [vmem:[%s163_s28 + $0x8] sm:$0xff] %v1921_v16 }
 0x1a7   : > { %2021 = shalt.err (!%p2018_p3)
}
 0x1a8   : > { %s2022_s10 = scalar_lea.hbm %s2278_s5, 384  ;;  %s2026_s19 = scalar_lea.hbm %s2323_s3, 768 }
 0x1a9   : > { %p2023_p4 = scmp.ne.s32.totalorder %s2278_s5, %s2022_s10  ;;  %p2027_p9 = scmp.lt.u32.totalorder %s2278_s5, %s2323_s3 }
 0x1aa   : > { %p2028_p10 = scmp.lt.u32.totalorder %s2026_s19, %s2022_s10  ;;  %p2030_p12 = scmp.lt.u32.totalorder %s2022_s10, %s2278_s5 }
 0x1ab   : > { %p2024_p7 = pnand %p2023_p4, %p2141_p5 }
 0x1ac   : > { %p2029_p11 = por %p2028_p10, %p2027_p9 }
 0x1ad   : > { %p2025_p8 = pneg %p2024_p7 }
 0x1ae   : > { %p2031_p13 = por %p2030_p12, %p2029_p11 }
 0x1b0   : > { %p2032_p0 = pnand %p2031_p13, %p2025_p8 }
 0x1b2   : > { %2035 = shalt.err (!%p2032_p0)
}
 0x1b3   : > { %1957 = dma.vmem_to_hbm [thread:$0]  (%p2141_p5), %s2280_s29, 384, %s2278_s5, %s1721_s16  }
 0x1b4 PF: > { %p1963_p1 = scmp.ge.s32.totalorder %s2070_s15, 2  ;;  %s1747_s25 = sand.u32 1, %s2058_s12  }
 0x1b5   : > { %s1748_s26 = scalar_lea.sflag [#allocation3], %s1747_s25 }
 0x1b6   : > { %p1960_p2 = pnand %p1963_p1, %p2145_p6 }
 0x1b8   : > { %2053 = dma.done.wait (!%p1960_p2), %s1748_s26, 384  }
 0x1b9   : > { %2055 = vsyncadd (!%p1960_p2), %s1748_s26, 4294966912  ;;  %p13_p3 = scmp.ge.s32.totalorder %s2128_s18, 4   ;;  %s2326_s12 = smov %s2062_s13 }
 0x1ba   : > { %s2327_s13 = smov %s2066_s14  ;;  %s2328_s14 = smov %s2139_s21 }
 0x1bb   : > { %s2329_s15 = smov %s2128_s18  ;;  %15 = sbr.rel (!%p13_p3) target bundleno = 3 (0x3), region = 75 }
 0x1c2   :  { %1753 = vsyncpa [#allocation3], 1 }
 0x1c3   :  { %1755 = vsyncpa [#allocation3 + $0x1], 1 }

</bundles_post_ra>
